<compile_context>
chip_gen: v7x
topology: tpu7x:2x2x1
jax: 0.10.0
libtpu: 0.0.40
codegen_flags: <defaults>
</compile_context>

<pallas_src>
import functools

import jax
import jax.numpy as jnp
from jax import lax
from jax.experimental import pallas as pl
from jax.experimental.pallas import tpu as pltpu

BN_EPS = 1e-5
LANES = 128


def _round_up(x, m):
    return (x + m - 1) // m * m


def _pick_tile_m(m_pad, k, c_pad, in_bytes, mid_bytes,
                 vmem_budget_bytes=20 * 1024 * 1024):
    """Largest M tile (multiple of 8) whose double-buffered working set stays
    under the budget.  Honest about the real VMEM layout: the (tile_m, K)
    patches tile is lane-padded to 128 (matters for K < 128), the (K, C_pad)
    weight tile is double-buffered too, and pass 2's in/out tiles are sized
    separately.  20 MiB keeps pipelining alive under v7x's 64 MiB physical /
    32 MiB scoped VMEM; v5e/v6e (128 MiB) simply use the same safe tiles."""
    k_lane = _round_up(k, LANES)
    fixed = 2 * _round_up(k, 8) * c_pad * in_bytes + 2 * 8 * c_pad * 4
    per_row = max(
        2 * (k_lane * in_bytes + c_pad * mid_bytes),   # pass 1: patches + conv_y
        2 * (c_pad * mid_bytes + c_pad * 4))           # pass 2: conv_y in + f32 out
    avail = max(vmem_budget_bytes - fixed, per_row)
    tm = avail // per_row
    tm = max(tm, 512)                 # amortize ~0.35us per grid step
    tm = min(tm, 4096, m_pad)
    return max(8, (tm // 8) * 8)


# ----------------------------- kernels ------------------------------------


def conv_stats_kernel(p_ref, w_ref, y_ref, stats_ref):
    """Pass 1 (training BN): (tile_m, K) @ (K, C_pad) on the MXU (f32 acc),
    stream the conv tile to HBM in the narrower intermediate dtype, and emit
    this tile's per-channel sum / sum-of-squares as an *independent* (8, C_pad)
    partial — no cross-tile accumulator, so the M axis stays "parallel"."""
    y = jnp.dot(p_ref[...], w_ref[...], preferred_element_type=jnp.float32)
    y_ref[...] = y.astype(y_ref.dtype)
    stats_ref[...] = jnp.zeros_like(stats_ref)
    stats_ref[0:1, :] = jnp.sum(y, axis=0, keepdims=True)
    stats_ref[1:2, :] = jnp.sum(y * y, axis=0, keepdims=True)


def bn_act_kernel(y_ref, prm_ref, o_ref, *, linear):
    """Pass 2: folded BatchNorm (one FMA) + optional PReLU (one select)."""
    y = y_ref[...].astype(jnp.float32)
    z = y * prm_ref[0:1, :] + prm_ref[1:2, :]
    if not linear:
        z = jnp.where(z > 0.0, z, prm_ref[2:3, :] * z)
    o_ref[...] = z.astype(o_ref.dtype)


def conv_bn_act_kernel(p_ref, w_ref, prm_ref, o_ref, *, linear):
    """Single-pass inference variant (BN running stats known ahead of time):
    conv on the MXU with BN + PReLU folded into the epilogue."""
    y = jnp.dot(p_ref[...], w_ref[...], preferred_element_type=jnp.float32)
    z = y * prm_ref[0:1, :] + prm_ref[1:2, :]
    if not linear:
        z = jnp.where(z > 0.0, z, prm_ref[2:3, :] * z)
    o_ref[...] = z.astype(o_ref.dtype)


# ----------------------------- wrapper glue --------------------------------


def _im2col(x_nhwc, KH, KW, sh, sw, ph, pw, Ho, Wo, compute_dtype):
    """Patch matrix (M, K) in compute_dtype.  1x1/pad-0 convs are a pure
    reshape (no read amplification).  k>1 convs still materialize (M, K) in
    HBM — see TODO(synk) in the header for the in-kernel tap-extraction plan."""
    N, H, W, Cin = x_nhwc.shape
    x = x_nhwc.astype(compute_dtype)          # cast first: slab is bf16 when enabled
    if KH == 1 and KW == 1 and ph == 0 and pw == 0:
        return x[:, ::sh, ::sw, :].reshape(N * Ho * Wo, Cin)
    xp = jnp.pad(x, ((0, 0), (ph, ph), (pw, pw), (0, 0)))
    cols = [xp[:, i:i + sh * Ho:sh, j:j + sw * Wo:sw, :]
            for i in range(KH) for j in range(KW)]
    return jnp.stack(cols, axis=3).reshape(N * Ho * Wo, KH * KW * Cin)


def _prepare_operands(x_nhwc, w_oihw, stride, padding, compute_dtype, tile_m):
    N, H, W, Cin = x_nhwc.shape
    Cout, _, KH, KW = w_oihw.shape
    sh, sw = stride
    ph, pw = padding
    Ho = (H + 2 * ph - KH) // sh + 1
    Wo = (W + 2 * pw - KW) // sw + 1

    M = N * Ho * Wo
    K = KH * KW * Cin
    C_pad = _round_up(Cout, LANES)            # lane-dense output (unmasked stores)
    in_bytes = jnp.dtype(compute_dtype).itemsize

    if tile_m is None:
        tile_m = _pick_tile_m(_round_up(M, 8), K, C_pad, in_bytes, in_bytes)
    M_pad = _round_up(M, tile_m)
    n_tiles = M_pad // tile_m

    patches = _im2col(x_nhwc, KH, KW, sh, sw, ph, pw, Ho, Wo, compute_dtype)
    patches = jnp.pad(patches, ((0, M_pad - M), (0, 0)))

    # PyTorch weight (Cout, Cin, KH, KW) -> (K, Cout), padded to 128 lanes.
    w_mat = jnp.transpose(w_oihw, (2, 3, 1, 0)).reshape(K, Cout)
    w_mat = jnp.pad(w_mat, ((0, 0), (0, C_pad - Cout))).astype(compute_dtype)

    dims = dict(N=N, Ho=Ho, Wo=Wo, M=M, K=K, Cout=Cout, C_pad=C_pad,
                M_pad=M_pad, tile_m=tile_m, n_tiles=n_tiles, in_bytes=in_bytes)
    return patches, w_mat, dims


def _fold_bn_params(mean, var, gamma, beta, alpha, Cout, C_pad, linear):
    """scale = gamma * rsqrt(var+eps); bias = beta - mean*scale; packed with the
    PReLU slope into a single (8, C_pad) f32 tile."""
    gamma_p = jnp.pad(gamma.astype(jnp.float32), (0, C_pad - Cout),
                      constant_values=1.0)
    beta_p = jnp.pad(beta.astype(jnp.float32), (0, C_pad - Cout))
    scale = gamma_p * lax.rsqrt(var + BN_EPS)
    bias = beta_p - mean * scale
    rows = [scale, bias]
    if not linear:
        rows.append(jnp.pad(alpha.astype(jnp.float32), (0, C_pad - Cout)))
    return jnp.zeros((8, C_pad), jnp.float32).at[:len(rows)].set(jnp.stack(rows))


def _finalize(out, dims, nhwc_out):
    out = out[:dims["M"], :dims["Cout"]].reshape(
        dims["N"], dims["Ho"], dims["Wo"], dims["Cout"])
    return out if nhwc_out else jnp.transpose(out, (0, 3, 1, 2))


# ----------------------------- forward passes ------------------------------


@functools.partial(
    jax.jit,
    static_argnames=("stride", "padding", "linear", "compute_dtype", "tile_m",
                     "nhwc_in", "nhwc_out"))
def conv_block_forward(x, w_oihw, gamma, beta, alpha=None,
                       stride=(2, 2), padding=(1, 1), *,
                       linear=False, compute_dtype=jnp.float32, tile_m=None,
                       nhwc_in=False, nhwc_out=False):
    """Training-mode ConvBlock (BatchNorm uses batch statistics): two passes."""
    x_nhwc = x if nhwc_in else jnp.transpose(x, (0, 2, 3, 1))
    patches, w_mat, d = _prepare_operands(x_nhwc, w_oihw, stride, padding,
                                          compute_dtype, tile_m)
    tile_m, n_tiles = d["tile_m"], d["n_tiles"]
    K, C_pad, M_pad = d["K"], d["C_pad"], d["M_pad"]
    in_bytes = d["in_bytes"]
    mid_dtype = compute_dtype                 # bf16 intermediate on the bf16 path
    mid_bytes = jnp.dtype(mid_dtype).itemsize

    # ---- pass 1: conv as matmul + per-tile sum / sumsq partials -----------
    bytes1 = (patches.size * in_bytes + w_mat.size * in_bytes
              + M_pad * C_pad * mid_bytes + n_tiles * 8 * C_pad * 4)
    conv_y, stats = pl.pallas_call(
        conv_stats_kernel,
        out_shape=(jax.ShapeDtypeStruct((M_pad, C_pad), mid_dtype),
                   jax.ShapeDtypeStruct((n_tiles, 8, C_pad), jnp.float32)),
        grid=(n_tiles,),
        in_specs=[pl.BlockSpec((tile_m, K), lambda i: (i, 0)),
                  pl.BlockSpec((K, C_pad), lambda i: (0, 0))],
        out_specs=(pl.BlockSpec((tile_m, C_pad), lambda i: (i, 0)),
                   pl.BlockSpec((None, 8, C_pad), lambda i: (i, 0, 0))),
        compiler_params=pltpu.CompilerParams(
            dimension_semantics=("parallel",),   # no cross-tile state -> v7x megacore
            vmem_limit_bytes=32 * 1024 * 1024,
            allow_input_fusion=[True, True],
        ),
        cost_estimate=pl.CostEstimate(flops=2 * M_pad * K * C_pad,
                                      transcendentals=0,
                                      bytes_accessed=bytes1),
    )(patches, w_mat)

    # ---- fold BN from the per-tile partials (tiny wrapper-side reduction) --
    # Padded rows/channels are exactly zero, so dividing by the true M is
    # correct; biased variance == nn.BatchNorm2d training semantics.
    ssum = jnp.sum(stats, axis=0)                             # (8, C_pad)
    mean = ssum[0] / d["M"]
    var = jnp.maximum(ssum[1] / d["M"] - mean * mean, 0.0)
    params = _fold_bn_params(mean, var, gamma, beta, alpha,
                             d["Cout"], C_pad, linear)

    # ---- pass 2: normalize + PReLU, independent tiles ("parallel") --------
    bytes2 = M_pad * C_pad * (mid_bytes + 4) + 8 * C_pad * 4
    out = pl.pallas_call(
        functools.partial(bn_act_kernel, linear=linear),
        out_shape=jax.ShapeDtypeStruct((M_pad, C_pad), jnp.float32),
        grid=(n_tiles,),
        in_specs=[pl.BlockSpec((tile_m, C_pad), lambda i: (i, 0)),
                  pl.BlockSpec((8, C_pad), lambda i: (0, 0))],
        out_specs=pl.BlockSpec((tile_m, C_pad), lambda i: (i, 0)),
        compiler_params=pltpu.CompilerParams(
            dimension_semantics=("parallel",),
            vmem_limit_bytes=32 * 1024 * 1024,
        ),
        cost_estimate=pl.CostEstimate(flops=3 * M_pad * C_pad,
                                      transcendentals=0,
                                      bytes_accessed=bytes2),
    )(conv_y, params)

    return _finalize(out, d, nhwc_out)


@functools.partial(
    jax.jit,
    static_argnames=("stride", "padding", "linear", "compute_dtype", "tile_m",
                     "nhwc_in", "nhwc_out"))
def conv_block_infer(x, w_oihw, gamma, beta, running_mean, running_var,
                     alpha=None, stride=(2, 2), padding=(1, 1), *,
                     linear=False, compute_dtype=jnp.float32, tile_m=None,
                     nhwc_in=False, nhwc_out=False):
    """Inference-mode ConvBlock (BatchNorm uses the provided running stats):
    single fused pass, no (M, C) intermediate round trip, no stats pass."""
    x_nhwc = x if nhwc_in else jnp.transpose(x, (0, 2, 3, 1))
    patches, w_mat, d = _prepare_operands(x_nhwc, w_oihw, stride, padding,
                                          compute_dtype, tile_m)
    tile_m, n_tiles = d["tile_m"], d["n_tiles"]
    K, C_pad, M_pad = d["K"], d["C_pad"], d["M_pad"]
    in_bytes = d["in_bytes"]

    mean = jnp.pad(running_mean.astype(jnp.float32), (0, C_pad - d["Cout"]))
    var = jnp.pad(running_var.astype(jnp.float32), (0, C_pad - d["Cout"]),
                  constant_values=1.0)
    params = _fold_bn_params(mean, var, gamma, beta, alpha,
                             d["Cout"], C_pad, linear)

    bytes1 = (patches.size * in_bytes + w_mat.size * in_bytes
              + 8 * C_pad * 4 + M_pad * C_pad * 4)
    out = pl.pallas_call(
        functools.partial(conv_bn_act_kernel, linear=linear),
        out_shape=jax.ShapeDtypeStruct((M_pad, C_pad), jnp.float32),
        grid=(n_tiles,),
        in_specs=[pl.BlockSpec((tile_m, K), lambda i: (i, 0)),
                  pl.BlockSpec((K, C_pad), lambda i: (0, 0)),
                  pl.BlockSpec((8, C_pad), lambda i: (0, 0))],
        out_specs=pl.BlockSpec((tile_m, C_pad), lambda i: (i, 0)),
        compiler_params=pltpu.CompilerParams(
            dimension_semantics=("parallel",),
            vmem_limit_bytes=32 * 1024 * 1024,
            allow_input_fusion=[True, True, False],
        ),
        cost_estimate=pl.CostEstimate(flops=2 * M_pad * K * C_pad + 3 * M_pad * C_pad,
                                      transcendentals=0,
                                      bytes_accessed=bytes1),
    )(patches, w_mat, params)

    return _finalize(out, d, nhwc_out)


# ----------------------------- reference -----------------------------------


def conv_block_reference(x_nchw, w_oihw, gamma, beta, alpha=None,
                         stride=(2, 2), padding=(1, 1)):
    """Plain-JAX reference reproducing the PyTorch ConvBlock forward
    (training-mode BatchNorm; alpha=None means linear=True)."""
    x = jnp.transpose(x_nchw, (0, 2, 3, 1))                           # NHWC
    w = jnp.transpose(w_oihw, (2, 3, 1, 0))                           # HWIO
    y = lax.conv_general_dilated(
        x, w, window_strides=stride,
        padding=((padding[0], padding[0]), (padding[1], padding[1])),
        dimension_numbers=('NHWC', 'HWIO', 'NHWC'))
    mean = jnp.mean(y, axis=(0, 1, 2), keepdims=True)
    var = jnp.mean((y - mean) ** 2, axis=(0, 1, 2), keepdims=True)    # biased
    y = (y - mean) * lax.rsqrt(var + BN_EPS) * gamma + beta
    if alpha is not None:
        y = jnp.where(y > 0.0, y, alpha * y)
    return jnp.transpose(y, (0, 3, 1, 2))                             # NCHW


if __name__ == "__main__":
    # Small shapes consistent with the module's first ConvBlock pattern.
    N, Cin, H, W = 2, 4, 16, 16
    Cout, KH, KW = 8, 3, 3

    key = jax.random.PRNGKey(0)
    kx, kw, kg, kb, ka, kx2, kw2, kg2, kb2 = jax.random.split(key, 9)

    x = jax.random.normal(kx, (N, Cin, H, W), dtype=jnp.float32)
    conv_w = 0.1 * jax.random.normal(kw, (Cout, Cin, KH, KW), dtype=jnp.float32)
    bn_gamma = 1.0 + 0.1 * jax.random.normal(kg, (Cout,), dtype=jnp.float32)
    bn_beta = 0.1 * jax.random.normal(kb, (Cout,), dtype=jnp.float32)
    prelu_alpha = 0.25 + 0.05 * jax.random.normal(ka, (Cout,), dtype=jnp.float32)

    ref = conv_block_reference(x, conv_w, bn_gamma, bn_beta, prelu_alpha)

    # 1) training-mode BN, f32 MXU path; tile_m=64 forces a multi-tile grid
    #    (M = 2*8*8 = 128 rows) to exercise the per-tile stats partials.
    out = conv_block_forward(x, conv_w, bn_gamma, bn_beta, prelu_alpha, tile_m=64)
    out = jax.block_until_ready(out)
    assert out.shape == (N, Cout, 8, 8), out.shape
    assert jnp.allclose(out, ref, rtol=1e-3, atol=1e-3), \
        float(jnp.max(jnp.abs(out - ref)))

    # 2) bf16 MXU feed + bf16 intermediate conv_y (halves patches / weight /
    #    intermediate DMA bytes; valid on v5e/v6e/v7x — v5e's MXU is native bf16).
    out_bf16 = conv_block_forward(x, conv_w, bn_gamma, bn_beta, prelu_alpha,
                                  compute_dtype=jnp.bfloat16, tile_m=64)
    out_bf16 = jax.block_until_ready(out_bf16)
    assert jnp.allclose(out_bf16, ref, rtol=1e-1, atol=1e-1), \
        float(jnp.max(jnp.abs(out_bf16 - ref)))

    # 3) single-pass inference path: feeding the batch statistics as "running
    #    stats" must reproduce the training-mode reference.
    y_conv = lax.conv_general_dilated(
        jnp.transpose(x, (0, 2, 3, 1)), jnp.transpose(conv_w, (2, 3, 1, 0)),
        (2, 2), ((1, 1), (1, 1)), dimension_numbers=('NHWC', 'HWIO', 'NHWC'))
    bmean = jnp.mean(y_conv, axis=(0, 1, 2))
    bvar = jnp.mean((y_conv - bmean) ** 2, axis=(0, 1, 2))
    out_inf = conv_block_infer(x, conv_w, bn_gamma, bn_beta, bmean, bvar,
                               prelu_alpha, tile_m=64)
    out_inf = jax.block_until_ready(out_inf)
    assert jnp.allclose(out_inf, ref, rtol=1e-3, atol=1e-3), \
        float(jnp.max(jnp.abs(out_inf - ref)))

    # 4) 1x1 pointwise, linear=True (mobileFaceNet's conv2 / linear1 pattern),
    #    NHWC in / NHWC out (no transpose glue), im2col-free fast path.
    x2 = jax.random.normal(kx2, (2, 8, 8, 8), dtype=jnp.float32)          # NCHW
    w2 = 0.1 * jax.random.normal(kw2, (16, 8, 1, 1), dtype=jnp.float32)
    g2 = 1.0 + 0.1 * jax.random.normal(kg2, (16,), dtype=jnp.float32)
    b2 = 0.1 * jax.random.normal(kb2, (16,), dtype=jnp.float32)
    ref2 = conv_block_reference(x2, w2, g2, b2, None, stride=(1, 1), padding=(0, 0))
    out2 = conv_block_forward(jnp.transpose(x2, (0, 2, 3, 1)), w2, g2, b2, None,
                              stride=(1, 1), padding=(0, 0), linear=True,
                              tile_m=64, nhwc_in=True, nhwc_out=True)
    out2 = jax.block_until_ready(out2)
    assert out2.shape == (2, 8, 8, 16), out2.shape
    assert jnp.allclose(jnp.transpose(out2, (0, 3, 1, 2)), ref2,
                        rtol=1e-3, atol=1e-3), \
        float(jnp.max(jnp.abs(jnp.transpose(out2, (0, 3, 1, 2)) - ref2)))

    print("KERNEL_OK")
</pallas_src>

<mosaic_0001>
module attributes {stable_mosaic.version = 11 : i64} {
  func.func @bn_act_kernel(%arg0: i32, %arg1: memref<64x128xf32, #tpu.memory_space<vmem>>, %arg2: memref<8x128xf32, #tpu.memory_space<vmem>>, %arg3: memref<64x128xf32, #tpu.memory_space<vmem>>) attributes {dimension_semantics = [#tpu.dimension_semantics<parallel>], iteration_bounds = array<i64: 2>, scalar_prefetch = 0 : i64, scratch_operands = 0 : i64, tpu.core_type = #tpu.core_type<tc>, window_params = [{transform_indices = @transform_0, window_bounds = array<i64: 64, 128>}, {pipeline_mode = #tpu.pipeline_mode<synchronous>, transform_indices = @transform_1, window_bounds = array<i64: 8, 128>}, {transform_indices = @transform_2, window_bounds = array<i64: 64, 128>}]} {
    %c0 = arith.constant 0 : index
    %c0_0 = arith.constant 0 : index
    %0 = vector.load %arg1[%c0, %c0_0] : memref<64x128xf32, #tpu.memory_space<vmem>>, vector<64x128xf32>
    %c0_1 = arith.constant 0 : index
    %c0_2 = arith.constant 0 : index
    %1 = vector.load %arg2[%c0_1, %c0_2] : memref<8x128xf32, #tpu.memory_space<vmem>>, vector<1x128xf32>
    %2 = vector.broadcast %1 : vector<1x128xf32> to vector<64x128xf32>
    %3 = arith.mulf %0, %2 : vector<64x128xf32>
    %c1 = arith.constant 1 : index
    %c0_3 = arith.constant 0 : index
    %4 = vector.load %arg2[%c1, %c0_3] : memref<8x128xf32, #tpu.memory_space<vmem>>, vector<1x128xf32>
    %5 = vector.broadcast %4 : vector<1x128xf32> to vector<64x128xf32>
    %6 = arith.addf %3, %5 : vector<64x128xf32>
    %cst = arith.constant 0.000000e+00 : f32
    %7 = vector.broadcast %cst : f32 to vector<64x128xf32>
    %8 = arith.cmpf ogt, %6, %7 : vector<64x128xf32>
    %c2 = arith.constant 2 : index
    %c0_4 = arith.constant 0 : index
    %9 = vector.load %arg2[%c2, %c0_4] : memref<8x128xf32, #tpu.memory_space<vmem>>, vector<1x128xf32>
    %10 = vector.broadcast %9 : vector<1x128xf32> to vector<64x128xf32>
    %11 = arith.mulf %10, %6 : vector<64x128xf32>
    %12 = arith.select %8, %6, %11 : vector<64x128xi1>, vector<64x128xf32>
    %c0_5 = arith.constant 0 : index
    %c0_6 = arith.constant 0 : index
    %13 = vector.load %arg3[%c0_5, %c0_6] : memref<64x128xf32, #tpu.memory_space<vmem>>, vector<64x128xf32>
    tpu.vector_store %arg3[%c0_5, %c0_6], %12 {strides = array<i32>} : memref<64x128xf32, #tpu.memory_space<vmem>>, vector<64x128xf32>,
    return
  }
  func.func @transform_0(%arg0: i32) -> (i32, i32) {
    %c0_i32 = arith.constant 0 : i32
    %c0_i32_0 = arith.constant 0 : i32
    return %arg0, %c0_i32 : i32, i32
  }
  func.func @transform_1(%arg0: i32) -> (i32, i32) {
    %c0_i32 = arith.constant 0 : i32
    %c0_i32_0 = arith.constant 0 : i32
    %c0_i32_1 = arith.constant 0 : i32
    return %c0_i32, %c0_i32_0 : i32, i32
  }
  func.func @transform_2(%arg0: i32) -> (i32, i32) {
    %c0_i32 = arith.constant 0 : i32
    %c0_i32_0 = arith.constant 0 : i32
    return %arg0, %c0_i32 : i32, i32
  }
}

module attributes {stable_mosaic.version = 11 : i64} {
  func.func @conv_stats_kernel(%arg0: i32, %arg1: memref<64x36xf32, #tpu.memory_space<vmem>>, %arg2: memref<36x128xf32, #tpu.memory_space<vmem>>, %arg3: memref<64x128xf32, #tpu.memory_space<vmem>>, %arg4: memref<1x8x128xf32, #tpu.memory_space<vmem>>) attributes {dimension_semantics = [#tpu.dimension_semantics<parallel>], iteration_bounds = array<i64: 2>, scalar_prefetch = 0 : i64, scratch_operands = 0 : i64, tpu.core_type = #tpu.core_type<tc>, window_params = [{transform_indices = @transform_0, window_bounds = array<i64: 64, 36>}, {pipeline_mode = #tpu.pipeline_mode<synchronous>, transform_indices = @transform_1, window_bounds = array<i64: 36, 128>}, {transform_indices = @transform_2, window_bounds = array<i64: 64, 128>}, {transform_indices = @transform_3, window_bounds = array<i64: 1, 8, 128>}]} {
    %c0 = arith.constant 0 : index
    %c0_0 = arith.constant 0 : index
    %0 = vector.load %arg1[%c0, %c0_0] : memref<64x36xf32, #tpu.memory_space<vmem>>, vector<64x36xf32>
    %c0_1 = arith.constant 0 : index
    %c0_2 = arith.constant 0 : index
    %1 = vector.load %arg2[%c0_1, %c0_2] : memref<36x128xf32, #tpu.memory_space<vmem>>, vector<36x128xf32>
    %cst = arith.constant dense<0.000000e+00> : vector<64x128xf32>
    %2 = tpu.matmul %0, %1, %cst {dimension_numbers = #tpu.dot_dimension_numbers<[1], [0], [0], [1], [0, 0, 1, 1], [], []>} : vector<64x36xf32>, vector<36x128xf32>, vector<64x128xf32> -> vector<64x128xf32>
    %c0_3 = arith.constant 0 : index
    %c0_4 = arith.constant 0 : index
    %3 = vector.load %arg3[%c0_3, %c0_4] : memref<64x128xf32, #tpu.memory_space<vmem>>, vector<64x128xf32>
    tpu.vector_store %arg3[%c0_3, %c0_4], %2 {strides = array<i32>} : memref<64x128xf32, #tpu.memory_space<vmem>>, vector<64x128xf32>,
    %cst_5 = arith.constant 0.000000e+00 : f32
    %4 = vector.broadcast %cst_5 : f32 to vector<8x128xf32>
    %c0_6 = arith.constant 0 : index
    %c0_7 = arith.constant 0 : index
    %c0_8 = arith.constant 0 : index
    %5 = vector.load %arg4[%c0_6, %c0_7, %c0_8] : memref<1x8x128xf32, #tpu.memory_space<vmem>>, vector<1x8x128xf32>
    %6 = vector.shape_cast %5 : vector<1x8x128xf32> to vector<8x128xf32>
    %7 = vector.shape_cast %4 : vector<8x128xf32> to vector<1x8x128xf32>
    tpu.vector_store %arg4[%c0_6, %c0_7, %c0_8], %7 {strides = array<i32>} : memref<1x8x128xf32, #tpu.memory_space<vmem>>, vector<1x8x128xf32>,
    %cst_9 = arith.constant dense<0.000000e+00> : vector<128xf32>
    %8 = vector.multi_reduction <add>, %2, %cst_9 [0] : vector<64x128xf32> to vector<128xf32>
    %9 = vector.shape_cast %8 : vector<128xf32> to vector<1x128xf32>
    %c0_10 = arith.constant 0 : index
    %c0_11 = arith.constant 0 : index
    %c0_12 = arith.constant 0 : index
    %10 = vector.load %arg4[%c0_10, %c0_11, %c0_12] : memref<1x8x128xf32, #tpu.memory_space<vmem>>, vector<1x1x128xf32>
    %11 = vector.shape_cast %10 : vector<1x1x128xf32> to vector<1x128xf32>
    %12 = vector.shape_cast %9 : vector<1x128xf32> to vector<1x1x128xf32>
    tpu.vector_store %arg4[%c0_10, %c0_11, %c0_12], %12 {strides = array<i32>} : memref<1x8x128xf32, #tpu.memory_space<vmem>>, vector<1x1x128xf32>,
    %13 = arith.mulf %2, %2 : vector<64x128xf32>
    %cst_13 = arith.constant dense<0.000000e+00> : vector<128xf32>
    %14 = vector.multi_reduction <add>, %13, %cst_13 [0] : vector<64x128xf32> to vector<128xf32>
    %15 = vector.shape_cast %14 : vector<128xf32> to vector<1x128xf32>
    %c0_14 = arith.constant 0 : index
    %c1 = arith.constant 1 : index
    %c0_15 = arith.constant 0 : index
    %16 = vector.load %arg4[%c0_14, %c1, %c0_15] : memref<1x8x128xf32, #tpu.memory_space<vmem>>, vector<1x1x128xf32>
    %17 = vector.shape_cast %16 : vector<1x1x128xf32> to vector<1x128xf32>
    %18 = vector.shape_cast %15 : vector<1x128xf32> to vector<1x1x128xf32>
    tpu.vector_store %arg4[%c0_14, %c1, %c0_15], %18 {strides = array<i32>} : memref<1x8x128xf32, #tpu.memory_space<vmem>>, vector<1x1x128xf32>,
    return
  }
  func.func @transform_0(%arg0: i32) -> (i32, i32) {
    %c0_i32 = arith.constant 0 : i32
    %c0_i32_0 = arith.constant 0 : i32
    return %arg0, %c0_i32 : i32, i32
  }
  func.func @transform_1(%arg0: i32) -> (i32, i32) {
    %c0_i32 = arith.constant 0 : i32
    %c0_i32_0 = arith.constant 0 : i32
    %c0_i32_1 = arith.constant 0 : i32
    return %c0_i32, %c0_i32_0 : i32, i32
  }
  func.func @transform_2(%arg0: i32) -> (i32, i32) {
    %c0_i32 = arith.constant 0 : i32
    %c0_i32_0 = arith.constant 0 : i32
    return %arg0, %c0_i32 : i32, i32
  }
  func.func @transform_3(%arg0: i32) -> (i32, i32, i32) {
    %c0_i32 = arith.constant 0 : i32
    %c0_i32_0 = arith.constant 0 : i32
    %c0_i32_1 = arith.constant 0 : i32
    return %arg0, %c0_i32, %c0_i32_0 : i32, i32, i32
  }
}

</mosaic_0001>

<bundles_post_ra>
// kernel: conv_block_forward.3
= control target key start
LH: loop header
LB: loop body
LE: loop exit
PB: predicated region body
PF: predicated region fallthrough
CT: control target
= control target key end

     0   :  { %s319_s9 = smov 0   ;;  %s358_s0 = inlined_call_operand.vmem [shape: f32[128,128], index: 0, kind: input, shape index: {}]   ;;  %s359_s1 = inlined_call_operand.vmem [shape: f32[8,128], index: 1, kind: input, shape index: {}]   ;;  %s360_s2 = inlined_call_operand.vmem [shape: f32[128,128], index: 2, kind: output, shape index: {}]  }
   0x1 LB: > { %s274_s10 = sadd.s32 4294967295, %s302_s9   ;;  %p278_p0 = scmp.ge.s32.totalorder %s302_s9, 1  ;;  %s302_s9 = sphi %s319_s9, %s12_s9  }
   0x2   : > { %p113_p1 = scmp.lt.s32.totalorder %s302_s9, 3 }
   0x4   : > { %p114_p2 = pnand %p278_p0, %p113_p1 }
   0x5   : > { %s279_s11 = sshll.u32 (!%p114_p2), %s274_s10, 3  ;;  %v283_v0 = vld [vmem:[%s359_s1] ss:$0 sm:$0xff] (!%p114_p2)  ;;  %v284_v1 = vld [vmem:[%s359_s1 + $0x1] ss:$0 sm:$0xff] (!%p114_p2) }
   0x6   : > { %117 = sbr.rel (%p114_p2) target bundleno = 31 (0x1f), region = 28  ;;  %p136_p3 = scmp.lt.s32.totalorder (!%p114_p2), %s279_s11, 15  ;;  %v285_v11 = vld [vmem:[%s359_s1 + $0x2] ss:$0 sm:$0xff] (!%p114_p2) }
   0xd   : > { %s362_s11 = smov (!%p136_p3, %s279_s11), 15 }
   0xe   : > { %s280_s12 = sshll.u32 %s362_s11, 3 }
   0xf   : > { %s139_s17 = scalar_lea.vmem %s358_s0, %s280_s12  ;;  %s345_s24 = scalar_lea.vmem %s360_s2, %s280_s12 }
  0x10   : > { %v147_v2 = vld [vmem:[%s139_s17] sm:$0xff]  ;;  %v148_v3 = vld [vmem:[%s139_s17 + $0x8] sm:$0xff]  ;;  %v149_v4 = vld [vmem:[%s139_s17 + $0x10] sm:$0xff] }
  0x11   : > { %v160_v5 = vmul.f32 %v283_v0, %v147_v2  ;;  %v161_v6 = vmul.f32 %v283_v0, %v148_v3  ;;  %v162_v7 = vmul.f32 %v283_v0, %v149_v4  ;;  %v150_v8 = vld [vmem:[%s139_s17 + $0x18] sm:$0xff]  ;;  %v151_v9 = vld [vmem:[%s139_s17 + $0x20] sm:$0xff]  ;;  %v152_v10 = vld [vmem:[%s139_s17 + $0x28] sm:$0xff] }
  0x12   : > { %v163_v12 = vmul.f32 %v283_v0, %v150_v8  ;;  %v164_v13 = vmul.f32 %v283_v0, %v151_v9  ;;  %v165_v14 = vmul.f32 %v283_v0, %v152_v10  ;;  %v153_v15 = vld [vmem:[%s139_s17 + $0x30] sm:$0xff]  ;;  %v154_v16 = vld [vmem:[%s139_s17 + $0x38] sm:$0xff] }
  0x13   : > { %v173_v17 = vadd.f32 %v284_v1, %v160_v5  ;;  %v174_v18 = vadd.f32 %v284_v1, %v161_v6  ;;  %v175_v19 = vadd.f32 %v284_v1, %v162_v7  ;;  %v166_v20 = vmul.f32 %v283_v0, %v153_v15 }
  0x14   : > { %v176_v21 = vadd.f32 %v284_v1, %v163_v12  ;;  %v177_v22 = vadd.f32 %v284_v1, %v164_v13  ;;  %v178_v23 = vadd.f32 %v284_v1, %v165_v14  ;;  %v167_v24 = vmul.f32 %v283_v0, %v154_v16 }
  0x15   : > { %vm181_vm0 = vcmp.gt.f32.partialorder %v173_v17, 0.0  ;;  %v194_v25 = vmul.f32 %v285_v11, %v173_v17  ;;  %vm182_vm1 = vcmp.gt.f32.partialorder %v174_v18, 0.0  ;;  %v195_v26 = vmul.f32 %v285_v11, %v174_v18 }
  0x16   : > { %vm183_vm2 = vcmp.gt.f32.partialorder %v175_v19, 0.0  ;;  %v196_v27 = vmul.f32 %v285_v11, %v175_v19  ;;  %vm184_vm3 = vcmp.gt.f32.partialorder %v176_v21, 0.0  ;;  %v197_v28 = vmul.f32 %v285_v11, %v176_v21 }
  0x17   : > { %v202_v29 = vsel %vm181_vm0, %v173_v17, %v194_v25  ;;  %v203_v30 = vsel %vm182_vm1, %v174_v18, %v195_v26  ;;  %vm185_vm4 = vcmp.gt.f32.partialorder %v177_v22, 0.0  ;;  %v198_v31 = vmul.f32 %v285_v11, %v177_v22 }
  0x18   : > { %210 = vst [vmem:[%s345_s24] sm:$0xff] %v202_v29  ;;  %211 = vst [vmem:[%s345_s24 + $0x8] sm:$0xff] %v203_v30  ;;  %v204_v32 = vsel %vm183_vm2, %v175_v19, %v196_v27  ;;  %v205_v33 = vsel %vm184_vm3, %v176_v21, %v197_v28  ;;  %vm186_vm5 = vcmp.gt.f32.partialorder %v178_v23, 0.0  ;;  %v199_v34 = vmul.f32 %v285_v11, %v178_v23 }
  0x19   : > { %212 = vst [vmem:[%s345_s24 + $0x10] sm:$0xff] %v204_v32  ;;  %213 = vst [vmem:[%s345_s24 + $0x18] sm:$0xff] %v205_v33  ;;  %v206_v35 = vsel %vm185_vm4, %v177_v22, %v198_v31  ;;  %v179_v36 = vadd.f32 %v284_v1, %v166_v20  ;;  %v180_v37 = vadd.f32 %v284_v1, %v167_v24 }
  0x1a   : > { %214 = vst [vmem:[%s345_s24 + $0x20] sm:$0xff] %v206_v35  ;;  %v207_v38 = vsel %vm186_vm5, %v178_v23, %v199_v34 }
  0x1b   : > { %215 = vst [vmem:[%s345_s24 + $0x28] sm:$0xff] %v207_v38  ;;  %vm187_vm6 = vcmp.gt.f32.partialorder %v179_v36, 0.0  ;;  %v200_v39 = vmul.f32 %v285_v11, %v179_v36  ;;  %vm188_vm7 = vcmp.gt.f32.partialorder %v180_v37, 0.0  ;;  %v201_v40 = vmul.f32 %v285_v11, %v180_v37 }
  0x1d   : > { %v208_v41 = vsel %vm187_vm6, %v179_v36, %v200_v39  ;;  %v209_v42 = vsel %vm188_vm7, %v180_v37, %v201_v40 }
  0x1e   : > { %216 = vst [vmem:[%s345_s24 + $0x30] sm:$0xff] %v208_v41  ;;  %217 = vst [vmem:[%s345_s24 + $0x38] sm:$0xff] %v209_v42 }
  0x1f PF: > { %s12_s9 = sadd.s32 1, %s302_s9  }
  0x20   : > { %p9_p4 = scmp.ge.s32.totalorder %s12_s9, 4  }
  0x22   :  { %11 = sbr.rel (!%p9_p4) target bundleno = 1 (0x1), region = 58 }

// kernel: conv_block_forward.4
= control target key start
LH: loop header
LB: loop body
LE: loop exit
PB: predicated region body
PF: predicated region fallthrough
CT: control target
= control target key end

     0   :  { %s661_s17 = smov 0   ;;  %s742_s0 = inlined_call_operand.vmem [shape: f32[128,36], index: 0, kind: input, shape index: {}]   ;;  %s743_s1 = inlined_call_operand.vmem [shape: f32[36,8], index: 1, kind: input, shape index: {}]   ;;  %s744_s2 = inlined_call_operand.<no memory space> [shape: f32[], index: 2, kind: input, shape index: {}]   ;;  %s745_s3 = inlined_call_operand.vmem [shape: f32[128,128], index: 3, kind: output, shape index: {0}]   ;;  %s746_s4 = inlined_call_operand.vmem [shape: f32[2,8,128], index: 4, kind: output, shape index: {1}]  }
   0x1   :  { %v659_v0 = vstv %s744_s2 }
   0x2 LB: > { %s667_s18 = sadd.s32 4294967295, %s628_s17   ;;  %p543_p0 = scmp.ge.s32.totalorder %s628_s17, 1  ;;  %s628_s17 = sphi %s661_s17, %s16_s17  }
   0x3   : > { %p143_p1 = scmp.lt.s32.totalorder %s628_s17, 3 }
   0x5   : > { %p144_p2 = pnand %p543_p0, %p143_p1 }
   0x7   : > { %147 = sbr.rel (%p144_p2) target bundleno = 277 (0x115), region = 28 }
   0xe   : > { %v193_v1 = vlaneseq  ;;  %s544_s2 = sshll.u32 %s667_s18, 3  ;;  %v187_v2 = vld [vmem:[%s743_s1] sm:$0xff]  ;;  %v549_v4 = vld [vmem:[%s743_s1 + $0x8] sm:$0xff]  ;;  %v550_v5 = vld [vmem:[%s743_s1 + $0x10] sm:$0xff]  ;;  %vm273_vm2 = vcmask 293888   ;;  %vm298_vm3 = vcmask 1043456  }
   0xf   : > { %p172_p3 = scmp.lt.s32.totalorder %s544_s2, 15  ;;  %v551_v6 = vld [vmem:[%s743_s1 + $0x18] sm:$0xff]  ;;  %v552_v8 = vld [vmem:[%s743_s1 + $0x20] sm:$0xff]  ;;  %p183_p4 = scmp.lt.s32.totalorder %s667_s18, 1  ;;  %v630_v27 = vmov 0.0  }
  0x10   : > { %v194_v3 = vand.u32 127, %v193_v1  ;;  %v248_v7 = vshrl.u32 %v193_v1, 7 }
  0x11   : > { %s748_s2 = smov (!%p172_p3, %s544_s2), 15  ;;  %s750_s18 = smov (!%p183_p4, %s667_s18), 1 }
  0x12   : > { %vm196_vm0 = vcmp.lt.s32.totalorder %v194_v3, 8  ;;  %v249_v9 = vadd.s32 32, %v248_v7  ;;  %s545_s29 = sshll.u32 %s748_s2, 3  ;;  %s548_s7 = sshll.u32 %s750_s18, 3 }
  0x13   : > { %v197_v10 = vsel %vm196_vm0, %v187_v2, %v659_v0  ;;  %v211_v11 = vsel %vm196_vm0, %v549_v4, %v659_v0  ;;  %v226_v12 = vsel %vm196_vm0, %v550_v5, %v659_v0  ;;  %v241_v13 = vsel %vm196_vm0, %v551_v6, %v659_v0  ;;  %s703_s6 = scalar_lea.vmem %s742_s0, %s545_s29  ;;  %s729_s10 = scalar_lea.vmem %s746_s4, %s548_s7 }
  0x14   : > { %v599_v14 = vpack.c.bf16 %v211_v11, %v197_v10  ;;  %v603_v15 = vpack.c.bf16 %v241_v13, %v226_v12  ;;  %vm250_vm1 = vcmp.lt.s32.totalorder %v249_v9, 36  ;;  %v260_v17 = vld [vmem:[%s703_s6] sm:$0xff]  ;;  %v261_v21 = vld [vmem:[%s703_s6 + $0x8] sm:$0xff]  ;;  %v262_v23 = vld [vmem:[%s703_s6 + $0x10] sm:$0xff]  ;;  %415 = vst [vmem:[%s729_s10] sm:$0xff] %v630_v27  ;;  %s181_s13 = scalar_lea.vmem %s745_s3, %s545_s29 }
  0x15   : > { %v251_v16 = vsel %vm250_vm1, %v552_v8, %v659_v0  ;;  %v264_v19 = vld [vmem:[%s703_s6 + $0x20] sm:$0xff]  ;;  %587 = vmatprep.mubr.msk.f32.mxu0 %vm273_vm2, %v260_v17  ;;  %v265_v22 = vld [vmem:[%s703_s6 + $0x28] sm:$0xff]  ;;  %v266_v24 = vld [vmem:[%s703_s6 + $0x30] sm:$0xff] }
  0x16   : > { %600 = vmatprep.subr.bf16.mxu0 %v599_v14  ;;  %607 = vmatprep.subr.bf16.mxu1 %v599_v14  ;;  %v256_v18 = vsel %vm196_vm0, %v251_v16, %v659_v0  ;;  %v263_v25 = vld [vmem:[%s703_s6 + $0x18] sm:$0xff] }
  0x17   : > { %602 = vmatpush3.bf16.msra.mxu0 %v599_v14  ;;  %610 = vmatpush3.bf16.msra.mxu1 %v599_v14  ;;  %259 = vst [vmem:[#allocation7 + $0x20] sm:$0xff] %v256_v18  ;;  %v267_v26 = vld [vmem:[%s703_s6 + $0x38] sm:$0xff] }
  0x18   : > { %604 = vmatprep.subr.bf16.mxu0 %v603_v15  ;;  %608 = vmatprep.subr.bf16.mxu1 %v603_v15 }
  0x19   : > { %593 = vmatprep.mubr.msk.f32.mxu1 %vm273_vm2, %v264_v19 }
  0x1b   : > { %606 = vmatpush3.bf16.msra.mxu0 %v603_v15  ;;  %611 = vmatpush3.bf16.msra.mxu1 %v603_v15 }
  0x1e   : > { %v272_v20 = vld [vmem:[#allocation7 + $0x20] sm:$0xf] }
  0x1f   : > { %585 = vmatprep.subr.msk.mxu0 %vm298_vm3, %v272_v20  ;;  %609 = vmatprep.subr.msk.mxu1 %vm298_vm3, %v272_v20 }
  0x20   : > { %586 = vmatpush3.msk.msra.mxu0 %vm298_vm3, %v272_v20  ;;  %612 = vmatpush3.msk.msra.mxu1 %vm298_vm3, %v272_v20 }
  0x21   : > { %588 = vmatmul.mubr.msk.f32.vlgmr.msra.gmra.mrb[0].mxu0 %vm273_vm2, %v261_v21  ;;  %594 = vmatmul.mubr.msk.f32.vlgmr.msra.gmra.mrb[0].mxu1 %vm273_vm2, %v265_v22 }
  0x22   : > { %590 = vmatprep.mubr.msk.f32.mxu0 %vm273_vm2, %v262_v23  ;;  %596 = vmatprep.mubr.msk.f32.mxu1 %vm273_vm2, %v266_v24 }
  0x25   : > { %591 = vmatmul.mubr.msk.f32.gmra.mrb[2].mxu0 %vm273_vm2, %v263_v25  ;;  %597 = vmatmul.mubr.msk.f32.gmra.mrb[2].mxu1 %vm273_vm2, %v267_v26 }
  0xf4   : > { %v589_v28 = vpop.f32.mrb[0].mxu0  ;;  %v595_v29 = vpop.f32.mrb[0].mxu1 }
  0xf5   : > { %408 = vst [vmem:[%s181_s13 + $0x8] sm:$0xff] %v589_v28  ;;  %v431_v30 = vmul.f32 %v589_v28, %v589_v28  ;;  %v368_v31 = vpop.f32.mrb[1].mxu0  ;;  %412 = vst [vmem:[%s181_s13 + $0x28] sm:$0xff] %v595_v29  ;;  %v388_v32 = vpop.f32.mrb[1].mxu1  ;;  %v435_v48 = vmul.f32 %v595_v29, %v595_v29 }
  0xf6   : > { %407 = vst [vmem:[%s181_s13] sm:$0xff] %v368_v31  ;;  %v416_v33 = vadd.f32 %v589_v28, %v368_v31  ;;  %v430_v34 = vmul.f32 %v368_v31, %v368_v31  ;;  %411 = vst [vmem:[%s181_s13 + $0x20] sm:$0xff] %v388_v32  ;;  %v434_v45 = vmul.f32 %v388_v32, %v388_v32 }
  0xf8   : > { %v438_v35 = vadd.f32 %v431_v30, %v430_v34  ;;  %v592_v36 = vpop.f32.mrb[2].mxu0  ;;  %v598_v37 = vpop.f32.mrb[2].mxu1 }
  0xf9   : > { %410 = vst [vmem:[%s181_s13 + $0x18] sm:$0xff] %v592_v36  ;;  %v378_v38 = vpop.f32.mrb[3].mxu0  ;;  %414 = vst [vmem:[%s181_s13 + $0x38] sm:$0xff] %v598_v37  ;;  %v398_v39 = vpop.f32.mrb[3].mxu1  ;;  %v433_v42 = vmul.f32 %v592_v36, %v592_v36  ;;  %v437_v54 = vmul.f32 %v598_v37, %v598_v37 }
  0xfa   : > { %409 = vst [vmem:[%s181_s13 + $0x10] sm:$0xff] %v378_v38  ;;  %v417_v40 = vadd.f32 %v416_v33, %v378_v38  ;;  %v432_v41 = vmul.f32 %v378_v38, %v378_v38  ;;  %413 = vst [vmem:[%s181_s13 + $0x30] sm:$0xff] %v398_v39  ;;  %v436_v51 = vmul.f32 %v398_v39, %v398_v39 }
  0xfc   : > { %v418_v43 = vadd.f32 %v592_v36, %v417_v40  ;;  %v439_v44 = vadd.f32 %v438_v35, %v432_v41 }
  0xfe   : > { %v440_v46 = vadd.f32 %v439_v44, %v433_v42  ;;  %v419_v47 = vadd.f32 %v418_v43, %v388_v32 }
 0x100   : > { %v441_v49 = vadd.f32 %v440_v46, %v434_v45  ;;  %v420_v50 = vadd.f32 %v595_v29, %v419_v47 }
 0x102   : > { %v421_v52 = vadd.f32 %v420_v50, %v398_v39  ;;  %v442_v53 = vadd.f32 %v441_v49, %v435_v48 }
 0x104   : > { %v422_v55 = vadd.f32 %v598_v37, %v421_v52  ;;  %v443_v56 = vadd.f32 %v442_v53, %v436_v51 }
 0x106   : > { %v423_v57 = vrot.slane %v422_v55, 4  ;;  %v444_v58 = vadd.f32 %v443_v56, %v437_v54 }
 0x108   : > { %v424_v59 = vadd.f32 %v423_v57, %v422_v55  ;;  %v445_v60 = vrot.slane %v444_v58, 4 }
 0x10a   : > { %v425_v61 = vrot.slane %v424_v59, 2  ;;  %v446_v62 = vadd.f32 %v445_v60, %v444_v58 }
 0x10c   : > { %v426_v63 = vadd.f32 %v425_v61, %v424_v59  ;;  %v447_v1 = vrot.slane %v446_v62, 2 }
 0x10e   : > { %v427_v2 = vrot.slane %v426_v63, 1  ;;  %v448_v3 = vadd.f32 %v447_v1, %v446_v62 }
 0x110   : > { %v428_v4 = vadd.f32 %v427_v2, %v426_v63  ;;  %v449_v5 = vrot.slane %v448_v3, 1 }
 0x112   : > { %429 = vst [vmem:[%s729_s10] sm:$0x1] %v428_v4  ;;  %v450_v6 = vadd.f32 %v449_v5, %v448_v3 }
 0x114   : > { %451 = vst [vmem:[%s729_s10 + $0x1] sm:$0x1] %v450_v6 }
 0x115 PF: > { %s16_s17 = sadd.s32 1, %s628_s17  }
 0x116   : > { %p13_p5 = scmp.ge.s32.totalorder %s16_s17, 4  }
 0x118   :  { %15 = sbr.rel (!%p13_p5) target bundleno = 2 (0x2), region = 78 }

</bundles_post_ra>
